<compile_context>
chip_gen: v7x
topology: tpu7x:2x2x1
jax: 0.10.0
libtpu: 0.0.40
codegen_flags: <defaults>
</compile_context>

<pallas_src>
import functools

import jax
import jax.numpy as jnp
from jax.experimental import pallas as pl
from jax.experimental.pallas import tpu as pltpu


def mlp_kernel(x_ref, w1_ref, b1_ref, w2_ref, b2_ref, o_ref):
    # Layer 1: hidden = x @ W1 + b1   (bias (1, Hp) broadcasts over batch rows)
    h = jnp.dot(x_ref[...], w1_ref[...],
                preferred_element_type=jnp.float32) + b1_ref[...]
    # Layer 2: out = hidden @ W2 + b2  (output ref is already f32 -> no cast)
    o_ref[...] = jnp.dot(h, w2_ref[...],
                         preferred_element_type=jnp.float32) + b2_ref[...]


def _round_up(n, m):
    return ((n + m - 1) // m) * m


def prepare_params(w1, b1, w2, b2):
    """Pad the static parameters ONCE (off the hot path).

    w1: (vocab, hidden), b1: (hidden,) or (1, hidden),
    w2: (hidden, out),   b2: (out,)   or (1, out).
    Returns padded params + the logical output dim.
    """
    V, H = w1.shape
    O = w2.shape[1]
    Vp, Hp, Op = _round_up(V, 128), _round_up(H, 128), _round_up(O, 128)

    w1p = jnp.pad(w1, ((0, Vp - V), (0, Hp - H)))
    b1p = jnp.pad(jnp.reshape(b1, (1, -1)), ((0, 0), (0, Hp - H)))
    w2p = jnp.pad(w2, ((0, Hp - H), (0, Op - O)))
    b2p = jnp.pad(jnp.reshape(b2, (1, -1)), ((0, 0), (0, Op - O)))
    return w1p, b1p, w2p, b2p, O


@functools.partial(jax.jit, static_argnames=("out_dim",))
def mlp_forward(x, w1p, b1p, w2p, b2p, out_dim):
    """x: (B, vocab) unpadded activations; params already padded.

    Pads only the activation to a full sublane/lane tile, runs the single-shot
    Pallas kernel with everything resident in VMEM, and slices back to the
    logical (B, out_dim).  All of this fuses into one jitted executable.
    """
    B, V = x.shape
    Vp = w1p.shape[0]
    Op = w2p.shape[1]
    Bp = _round_up(B, 8)

    xp = jnp.pad(x, ((0, Bp - B), (0, Vp - V)))

    vmem = pl.BlockSpec(memory_space=pltpu.MemorySpace.VMEM)

    out_padded = pl.pallas_call(
        mlp_kernel,
        out_shape=jax.ShapeDtypeStruct((Bp, Op), jnp.float32),
        in_specs=[vmem] * 5,
        out_specs=vmem,
    )(xp, w1p, b1p, w2p, b2p)

    # Padded batch rows / output cols are discarded here (fused slice).
    return out_padded[:B, :out_dim]


if __name__ == "__main__":
    # Small shapes consistent with the module:
    #   vocab_size (len(word2idx)) -> 32, hidden_dim = 10, output_dim -> 8
    batch = 2
    vocab_size = 32
    hidden_dim = 10
    output_dim = 8

    key = jax.random.PRNGKey(0)
    kx, kw1, kb1, kw2, kb2 = jax.random.split(key, 5)

    x = jax.random.normal(kx, (batch, vocab_size), dtype=jnp.float32)

    # Deterministic nn.Linear-style init: U(-1/sqrt(fan_in), 1/sqrt(fan_in)).
    bound1 = 1.0 / jnp.sqrt(vocab_size)
    w1 = jax.random.uniform(kw1, (vocab_size, hidden_dim), jnp.float32,
                            -bound1, bound1)
    b1 = jax.random.uniform(kb1, (hidden_dim,), jnp.float32, -bound1, bound1)

    bound2 = 1.0 / jnp.sqrt(hidden_dim)
    w2 = jax.random.uniform(kw2, (hidden_dim, output_dim), jnp.float32,
                            -bound2, bound2)
    b2 = jax.random.uniform(kb2, (output_dim,), jnp.float32, -bound2, bound2)

    # One-time parameter preparation (padding) — off the per-forward hot path.
    w1p, b1p, w2p, b2p, out_dim = prepare_params(w1, b1, w2, b2)
    jax.block_until_ready((w1p, b1p, w2p, b2p))

    out = mlp_forward(x, w1p, b1p, w2p, b2p, out_dim)
    jax.block_until_ready(out)

    # Sanity check against plain JAX reference.
    ref = (x @ w1 + b1[None, :]) @ w2 + b2[None, :]
    assert out.shape == (batch, output_dim)
    assert jnp.allclose(out, ref, atol=1e-5, rtol=1e-5)

    print("KERNEL_OK")
</pallas_src>

<mosaic_0001>
module attributes {stable_mosaic.version = 11 : i64} {
  func.func @mlp_kernel(%arg0: memref<8x128xf32, #tpu.memory_space<vmem>>, %arg1: memref<128x128xf32, #tpu.memory_space<vmem>>, %arg2: memref<1x128xf32, #tpu.memory_space<vmem>>, %arg3: memref<128x128xf32, #tpu.memory_space<vmem>>, %arg4: memref<1x128xf32, #tpu.memory_space<vmem>>, %arg5: memref<8x128xf32, #tpu.memory_space<vmem>>) attributes {dimension_semantics = [], scalar_prefetch = 0 : i64, scratch_operands = 0 : i64, tpu.core_type = #tpu.core_type<tc>} {
    %c0 = arith.constant 0 : index
    %c0_0 = arith.constant 0 : index
    %0 = vector.load %arg0[%c0, %c0_0] : memref<8x128xf32, #tpu.memory_space<vmem>>, vector<8x128xf32>
    %c0_1 = arith.constant 0 : index
    %c0_2 = arith.constant 0 : index
    %1 = vector.load %arg1[%c0_1, %c0_2] : memref<128x128xf32, #tpu.memory_space<vmem>>, vector<128x128xf32>
    %cst = arith.constant dense<0.000000e+00> : vector<8x128xf32>
    %2 = tpu.matmul %0, %1, %cst {dimension_numbers = #tpu.dot_dimension_numbers<[1], [0], [0], [1], [0, 0, 1, 1], [], []>} : vector<8x128xf32>, vector<128x128xf32>, vector<8x128xf32> -> vector<8x128xf32>
    %c0_3 = arith.constant 0 : index
    %c0_4 = arith.constant 0 : index
    %3 = vector.load %arg2[%c0_3, %c0_4] : memref<1x128xf32, #tpu.memory_space<vmem>>, vector<1x128xf32>
    %4 = vector.broadcast %3 : vector<1x128xf32> to vector<8x128xf32>
    %5 = arith.addf %2, %4 : vector<8x128xf32>
    %c0_5 = arith.constant 0 : index
    %c0_6 = arith.constant 0 : index
    %6 = vector.load %arg3[%c0_5, %c0_6] : memref<128x128xf32, #tpu.memory_space<vmem>>, vector<128x128xf32>
    %cst_7 = arith.constant dense<0.000000e+00> : vector<8x128xf32>
    %7 = tpu.matmul %5, %6, %cst_7 {dimension_numbers = #tpu.dot_dimension_numbers<[1], [0], [0], [1], [0, 0, 1, 1], [], []>} : vector<8x128xf32>, vector<128x128xf32>, vector<8x128xf32> -> vector<8x128xf32>
    %c0_8 = arith.constant 0 : index
    %c0_9 = arith.constant 0 : index
    %8 = vector.load %arg4[%c0_8, %c0_9] : memref<1x128xf32, #tpu.memory_space<vmem>>, vector<1x128xf32>
    %9 = vector.broadcast %8 : vector<1x128xf32> to vector<8x128xf32>
    %10 = arith.addf %7, %9 : vector<8x128xf32>
    %c0_10 = arith.constant 0 : index
    %c0_11 = arith.constant 0 : index
    %11 = vector.load %arg5[%c0_10, %c0_11] : memref<8x128xf32, #tpu.memory_space<vmem>>, vector<8x128xf32>
    tpu.vector_store %arg5[%c0_10, %c0_11], %10 {strides = array<i32>} : memref<8x128xf32, #tpu.memory_space<vmem>>, vector<8x128xf32>,
    return
  }
}

</mosaic_0001>

<bundles_post_ra>
// kernel: mlp_forward.1
= control target key start
LH: loop header
LB: loop body
LE: loop exit
PB: predicated region body
PF: predicated region fallthrough
CT: control target
= control target key end

     0   :  { %10 = vsyncpa [#allocation3], 0  ;;  %s540_s0 = inlined_call_operand.vmem [shape: f32[8,128], index: 0, kind: input, shape index: {}]   ;;  %s541_s1 = inlined_call_operand.hbm [shape: f32[128,128], index: 1, kind: input, shape index: {}]   ;;  %s542_s2 = inlined_call_operand.vmem [shape: f32[1,128], index: 2, kind: input, shape index: {}]   ;;  %s543_s3 = inlined_call_operand.hbm [shape: f32[128,128], index: 3, kind: input, shape index: {}]   ;;  %s544_s4 = inlined_call_operand.vmem [shape: f32[1,128], index: 4, kind: input, shape index: {}]   ;;  %s545_s5 = inlined_call_operand.vmem [shape: f32[8,128], index: 5, kind: output, shape index: {}]  }
   0x1   :  { %11 = vsyncpa [#allocation5], 0  ;;  %s451_s18 = smov [#allocation2]   ;;  %s403_s22 = scalar_lea.hbm %s541_s1, 2048 }
   0x2   :  { %s19_s19 = sshll.u32 %s451_s18, 4  ;;  %p404_p0 = scmp.ne.s32.totalorder %s541_s1, %s403_s22  ;;  %s20_s19 = int_to_ptr.vmem [resolvable:$true] %s19_s19 }
   0x3   :  { %p407_p1 = scmp.lt.u32.totalorder %s403_s22, %s541_s1 }
   0x5   :  { %p409_p2 = pnand %p407_p1, %p404_p0 }
   0x7   :  { %412 = shalt.err (!%p409_p2)
}
   0x8   :  { %s413_s27 = scalar_lea.vmem %s20_s19, 2048  ;;  %p418_p4 = scmp.lt.s32.totalorder %s20_s19, %s20_s19 }
   0x9   :  { %p414_p3 = scmp.ne.s32.totalorder %s20_s19, %s413_s27  ;;  %p419_p5 = scmp.lt.s32.totalorder %s413_s27, %s413_s27 }
   0xb   :  { %p420_p6 = por %p419_p5, %p418_p4 }
   0xd   :  { %p421_p7 = pnand %p420_p6, %p414_p3 }
   0xf   :  { %424 = shalt.err (!%p421_p7)
}
  0x10   :  { %s452_s28 = smov 128   ;;  %s453_s29 = smov 8  }
  0x11   :  { %25 = dma.hbm_to_vmem [thread:$0]  %s541_s1, 2048, %s20_s19, [#allocation3], %s452_s28, %s452_s28, %s453_s29  }
  0x12   :  { %s454_s7 = smov [#allocation4]   ;;  %s425_s11 = scalar_lea.hbm %s543_s3, 2048 }
  0x13   :  { %s33_s8 = sshll.u32 %s454_s7, 4  ;;  %p426_p8 = scmp.ne.s32.totalorder %s543_s3, %s425_s11  ;;  %s34_s8 = int_to_ptr.vmem [resolvable:$true] %s33_s8 }
  0x14   :  { %p429_p9 = scmp.lt.u32.totalorder %s425_s11, %s543_s3 }
  0x16   :  { %p431_p10 = pnand %p429_p9, %p426_p8 }
  0x18   :  { %434 = shalt.err (!%p431_p10)
}
  0x19   :  { %s435_s16 = scalar_lea.vmem %s34_s8, 2048  ;;  %p440_p12 = scmp.lt.s32.totalorder %s34_s8, %s34_s8 }
  0x1a   :  { %p436_p11 = scmp.ne.s32.totalorder %s34_s8, %s435_s16  ;;  %p441_p13 = scmp.lt.s32.totalorder %s435_s16, %s435_s16 }
  0x1c   :  { %p442_p0 = por %p441_p13, %p440_p12 }
  0x1e   :  { %p443_p1 = pnand %p442_p0, %p436_p11 }
  0x20   :  { %446 = shalt.err (!%p443_p1)
}
  0x21   :  { %39 = dma.hbm_to_vmem [thread:$0]  %s543_s3, 2048, %s34_s8, [#allocation5], %s452_s28, %s452_s28, %s453_s29  }
  0x22   :  { %447 = dma.done.wait [#allocation3], 2048  }
  0x23   :  { %448 = vsyncadd [#allocation3], 4294965248 }
  0x24   :  { %449 = dma.done.wait [#allocation5], 2048  }
  0x25   :  { %450 = vsyncadd [#allocation5], 4294965248  ;;  %v455_v0 = vmov 0.0|0.0   ;;  %vm456_vm0 = vmmov 0   ;;  %v457_v1 = vmov 0.0   ;;  %v49_v2 = vld [vmem:[#allocation2] sm:$0xff] }
  0x26   :  { %348 = vmatprep.subr.bf16.mxu0 %v455_v0  ;;  %310 = vmatprep.mubr.msk.f32.mxu0 %vm456_vm0, %v457_v1  ;;  %v50_v3 = vld [vmem:[#allocation2 + $0x8] sm:$0xff]  ;;  %v51_v4 = vld [vmem:[#allocation2 + $0x10] sm:$0xff]  ;;  %v52_v6 = vld [vmem:[#allocation2 + $0x18] sm:$0xff] }
  0x27   :  { %372 = vmatprep.subr.bf16.mxu1 %v455_v0  ;;  %345 = vmatprep.mubr.msk.f32.mxu1 %vm456_vm0, %v457_v1  ;;  %v349_v5 = vpack.c.bf16 %v50_v3, %v49_v2  ;;  %v352_v7 = vpack.c.bf16 %v52_v6, %v51_v4  ;;  %v53_v8 = vld [vmem:[#allocation2 + $0x20] sm:$0xff]  ;;  %v54_v9 = vld [vmem:[#allocation2 + $0x28] sm:$0xff]  ;;  %v144_v12 = vld [vmem:[#allocation4 + $0x10] sm:$0xff] }
  0x28   :  { %v142_v10 = vld [vmem:[#allocation4] sm:$0xff]  ;;  %v143_v11 = vld [vmem:[#allocation4 + $0x8] sm:$0xff]  ;;  %v145_v13 = vld [vmem:[#allocation4 + $0x18] sm:$0xff]  ;;  %v355_v14 = vpack.c.bf16 %v54_v9, %v53_v8 }
  0x29   :  { %350 = vmatpush3.bf16.msra.mxu0 %v349_v5  ;;  %v373_v15 = vpack.c.bf16 %v143_v11, %v142_v10  ;;  %v55_v16 = vld [vmem:[#allocation2 + $0x30] sm:$0xff]  ;;  %v56_v17 = vld [vmem:[#allocation2 + $0x38] sm:$0xff]  ;;  %v376_v18 = vpack.c.bf16 %v145_v13, %v144_v12  ;;  %v146_v19 = vld [vmem:[#allocation4 + $0x20] sm:$0xff] }
  0x2a   :  { %351 = vmatprep.subr.bf16.mxu0 %v455_v0  ;;  %v147_v20 = vld [vmem:[#allocation4 + $0x28] sm:$0xff]  ;;  %v358_v21 = vpack.c.bf16 %v56_v17, %v55_v16  ;;  %v57_v22 = vld [vmem:[#allocation2 + $0x40] sm:$0xff]  ;;  %v148_v25 = vld [vmem:[#allocation4 + $0x30] sm:$0xff] }
  0x2b   :  { %374 = vmatpush3.bf16.msra.mxu1 %v373_v15  ;;  %v58_v23 = vld [vmem:[#allocation2 + $0x48] sm:$0xff]  ;;  %v379_v24 = vpack.c.bf16 %v147_v20, %v146_v19  ;;  %v149_v26 = vld [vmem:[#allocation4 + $0x38] sm:$0xff]  ;;  %v59_v28 = vld [vmem:[#allocation2 + $0x50] sm:$0xff] }
  0x2c   :  { %375 = vmatprep.subr.bf16.mxu1 %v455_v0  ;;  %v361_v27 = vpack.c.bf16 %v58_v23, %v57_v22  ;;  %v60_v29 = vld [vmem:[#allocation2 + $0x58] sm:$0xff]  ;;  %v382_v30 = vpack.c.bf16 %v149_v26, %v148_v25  ;;  %v150_v31 = vld [vmem:[#allocation4 + $0x40] sm:$0xff]  ;;  %v151_v32 = vld [vmem:[#allocation4 + $0x48] sm:$0xff] }
  0x2d   :  { %353 = vmatpush3.bf16.msra.mxu0 %v352_v7  ;;  %v364_v33 = vpack.c.bf16 %v60_v29, %v59_v28  ;;  %v61_v34 = vld [vmem:[#allocation2 + $0x60] sm:$0xff]  ;;  %v62_v35 = vld [vmem:[#allocation2 + $0x68] sm:$0xff]  ;;  %v385_v36 = vpack.c.bf16 %v151_v32, %v150_v31  ;;  %v152_v37 = vld [vmem:[#allocation4 + $0x50] sm:$0xff] }
  0x2e   :  { %354 = vmatprep.subr.bf16.mxu0 %v455_v0  ;;  %v153_v38 = vld [vmem:[#allocation4 + $0x58] sm:$0xff]  ;;  %v367_v39 = vpack.c.bf16 %v62_v35, %v61_v34  ;;  %v63_v40 = vld [vmem:[#allocation2 + $0x70] sm:$0xff]  ;;  %v154_v43 = vld [vmem:[#allocation4 + $0x60] sm:$0xff] }
  0x2f   :  { %377 = vmatpush3.bf16.msra.mxu1 %v376_v18  ;;  %v64_v41 = vld [vmem:[#allocation2 + $0x78] sm:$0xff]  ;;  %v388_v42 = vpack.c.bf16 %v153_v38, %v152_v37  ;;  %v155_v44 = vld [vmem:[#allocation4 + $0x68] sm:$0xff]  ;;  %v48_v47 = vld [vmem:[%s540_s0] sm:$0xff] }
  0x30   :  { %378 = vmatprep.subr.bf16.mxu1 %v455_v0  ;;  %v370_v45 = vpack.c.bf16 %v64_v41, %v63_v40  ;;  %v391_v46 = vpack.c.bf16 %v155_v44, %v154_v43  ;;  %v156_v48 = vld [vmem:[#allocation4 + $0x70] sm:$0xff]  ;;  %v157_v49 = vld [vmem:[#allocation4 + $0x78] sm:$0xff]  ;;  %v242_v51 = vld [vmem:[%s542_s2] ss:$0 sm:$0xff] }
  0x31   :  { %356 = vmatpush3.bf16.msra.mxu0 %v355_v14  ;;  %v394_v50 = vpack.c.bf16 %v157_v49, %v156_v48  ;;  %v243_v55 = vld [vmem:[%s544_s4] ss:$0 sm:$0xff] }
  0x32   :  { %357 = vmatprep.subr.bf16.mxu0 %v455_v0 }
  0x33   :  { %380 = vmatpush3.bf16.msra.mxu1 %v379_v24 }
  0x34   :  { %381 = vmatprep.subr.bf16.mxu1 %v455_v0 }
  0x35   :  { %359 = vmatpush3.bf16.msra.mxu0 %v358_v21 }
  0x36   :  { %360 = vmatprep.subr.bf16.mxu0 %v455_v0 }
  0x37   :  { %383 = vmatpush3.bf16.msra.mxu1 %v382_v30 }
  0x38   :  { %384 = vmatprep.subr.bf16.mxu1 %v455_v0 }
  0x39   :  { %362 = vmatpush3.bf16.msra.mxu0 %v361_v27 }
  0x3a   :  { %363 = vmatprep.subr.bf16.mxu0 %v455_v0 }
  0x3b   :  { %386 = vmatpush3.bf16.msra.mxu1 %v385_v36 }
  0x3c   :  { %387 = vmatprep.subr.bf16.mxu1 %v455_v0 }
  0x3d   :  { %365 = vmatpush3.bf16.msra.mxu0 %v364_v33 }
  0x3e   :  { %366 = vmatprep.subr.bf16.mxu0 %v455_v0 }
  0x3f   :  { %389 = vmatpush3.bf16.msra.mxu1 %v388_v42 }
  0x40   :  { %390 = vmatprep.subr.bf16.mxu1 %v455_v0 }
  0x41   :  { %368 = vmatpush3.bf16.msra.mxu0 %v367_v39 }
  0x42   :  { %369 = vmatprep.subr.bf16.mxu0 %v455_v0 }
  0x43   :  { %392 = vmatpush3.bf16.msra.mxu1 %v391_v46 }
  0x44   :  { %393 = vmatprep.subr.bf16.mxu1 %v455_v0 }
  0x45   :  { %371 = vmatpush3.bf16.msra.mxu0 %v370_v45 }
  0x47   :  { %395 = vmatpush3.bf16.msra.mxu1 %v394_v50 }
  0x48   :  { %311 = vmatmul.mubr.f32.vlgmr.msra.gmra.mrb[0].mxu0 %v48_v47 }
 0x11b   :  { %v138_v52 = vpop.f32.mrb[0].mxu0 }
 0x11c   :  { %v139_v53 = vadd.f32 %v242_v51, %v138_v52  ;;  %v312_v54 = vpop.f32.mrb[1].mxu0 }
 0x11e   :  { %346 = vmatmul.mubr.f32.vlgmr.msra.gmra.mrb[0].mxu1 %v139_v53 }
 0x1f1   :  { %v231_v56 = vpop.f32.mrb[0].mxu1 }
 0x1f2   :  { %v232_v57 = vadd.f32 %v243_v55, %v231_v56  ;;  %v347_v58 = vpop.f32.mrb[1].mxu1 }
 0x1f4   :  { %235 = vst [vmem:[%s545_s5] sm:$0xff] %v232_v57 }
 0x1f5   :  { %240 = vsyncpa [#allocation3], 1 }
 0x1f6   :  { %241 = vsyncpa [#allocation5], 1 }

</bundles_post_ra>
